<compile_context>
chip_gen: v6e
topology: v6e:2x2x1
jax: 0.10.0
libtpu: 0.0.40
codegen_flags: <defaults>
</compile_context>

<pallas_src>
import jax
import jax.numpy as jnp
from jax.experimental import pallas as pl
from jax.experimental.pallas import tpu as pltpu


VAR_EPS = 0.001


def gcn_kernel(x_ref, o_ref):
    # x_ref block: (H, T) -- reduction (original dim 2) is on the sublane axis.
    x = x_ref[...].astype(jnp.float32)
    h = x.shape[0]
    m = jnp.mean(x, axis=0, keepdims=True)                      # (1, T)
    centered = x - m
    # Unbiased variance (torch.var default: correction=1).
    # Note: h == 1 produces inf/NaN, matching torch.var semantics.
    v = jnp.sum(centered * centered, axis=0, keepdims=True) / (h - 1)
    inv = jax.lax.rsqrt(v + VAR_EPS)                            # EUP vrsqrt
    o_ref[...] = (centered * inv).astype(o_ref.dtype)


def _pick_lane_tile(n, h, itemsize, target_block_bytes=2 * 1024 * 1024):
    """Largest multiple of 128 that divides n with H*T*itemsize <= target."""
    if n % 128 != 0:
        # Can't tile the lane axis cleanly; use one full-width block
        # (block dims equal to the full array dims are always legal).
        return n
    max_lanes = (target_block_bytes // (h * itemsize)) // 128 * 128
    t = min(n, max(128, max_lanes))
    t = (t // 128) * 128
    while n % t != 0:        # terminates: n % 128 == 0
        t -= 128
    return t


def gcn_forward(x):
    B, C, H, W = x.shape
    N = B * C * W

    # Lane-dense relayout: reduction axis (H) on sublanes, everything else
    # flattened onto the lane axis.
    x2d = jnp.transpose(x, (2, 0, 1, 3)).reshape(H, N)

    T = _pick_lane_tile(N, H, x2d.dtype.itemsize)
    grid = (N // T,)

    out2d = pl.pallas_call(
        gcn_kernel,
        out_shape=jax.ShapeDtypeStruct((H, N), x.dtype),
        grid_spec=pltpu.PrefetchScalarGridSpec(
            num_scalar_prefetch=0,
            grid=grid,
            in_specs=[pl.BlockSpec((H, T), lambda i: (0, i))],
            out_specs=pl.BlockSpec((H, T), lambda i: (0, i)),
        ),
        compiler_params=pltpu.CompilerParams(
            dimension_semantics=("parallel",),
            vmem_limit_bytes=32 * 1024 * 1024,
        ),
    )(x2d)

    # Back to NCHW.
    return jnp.transpose(out2d.reshape(H, B, C, W), (1, 2, 0, 3))


def gcn_reference(x):
    xf = x.astype(jnp.float32)
    m = jnp.mean(xf, axis=2, keepdims=True)
    v = jnp.var(xf, axis=2, keepdims=True, ddof=1)  # unbiased, matches torch.var
    inv = 1.0 / jnp.sqrt(v + VAR_EPS)
    return ((xf - m) * inv).astype(x.dtype)


if __name__ == "__main__":
    key = jax.random.PRNGKey(0)
    # Small NCHW input consistent with the module's conv-style usage.
    x = jax.random.normal(key, (2, 4, 16, 16), dtype=jnp.float32)

    out = gcn_forward(x)
    out = jax.block_until_ready(out)

    ref = gcn_reference(x)
    assert out.shape == x.shape
    assert jnp.allclose(out, ref, atol=1e-5, rtol=1e-5), "mismatch vs reference"

    print("KERNEL_OK")
</pallas_src>

<mosaic_0001>
module attributes {stable_mosaic.version = 11 : i64} {
  func.func @gcn_kernel(%arg0: i32, %arg1: memref<16x128xf32, #tpu.memory_space<vmem>>, %arg2: memref<16x128xf32, #tpu.memory_space<vmem>>) attributes {dimension_semantics = [#tpu.dimension_semantics<parallel>], iteration_bounds = array<i64: 1>, scalar_prefetch = 0 : i64, scratch_operands = 0 : i64, tpu.core_type = #tpu.core_type<tc>, window_params = [{transform_indices = @transform_0, window_bounds = array<i64: 16, 128>}, {transform_indices = @transform_1, window_bounds = array<i64: 16, 128>}]} {
    %c0 = arith.constant 0 : index
    %c0_0 = arith.constant 0 : index
    %0 = vector.load %arg1[%c0, %c0_0] : memref<16x128xf32, #tpu.memory_space<vmem>>, vector<16x128xf32>
    %cst = arith.constant dense<0.000000e+00> : vector<128xf32>
    %1 = vector.multi_reduction <add>, %0, %cst [0] : vector<16x128xf32> to vector<128xf32>
    %2 = vector.shape_cast %1 : vector<128xf32> to vector<1x128xf32>
    %cst_1 = arith.constant 1.600000e+01 : f32
    %3 = vector.broadcast %cst_1 : f32 to vector<1x128xf32>
    %4 = arith.divf %2, %3 : vector<1x128xf32>
    %5 = vector.broadcast %4 : vector<1x128xf32> to vector<16x128xf32>
    %6 = arith.subf %0, %5 : vector<16x128xf32>
    %7 = arith.mulf %6, %6 : vector<16x128xf32>
    %cst_2 = arith.constant dense<0.000000e+00> : vector<128xf32>
    %8 = vector.multi_reduction <add>, %7, %cst_2 [0] : vector<16x128xf32> to vector<128xf32>
    %9 = vector.shape_cast %8 : vector<128xf32> to vector<1x128xf32>
    %cst_3 = arith.constant 1.500000e+01 : f32
    %10 = vector.broadcast %cst_3 : f32 to vector<1x128xf32>
    %11 = arith.divf %9, %10 : vector<1x128xf32>
    %cst_4 = arith.constant 1.000000e-03 : f32
    %12 = vector.broadcast %cst_4 : f32 to vector<1x128xf32>
    %13 = arith.addf %11, %12 : vector<1x128xf32>
    %14 = math.rsqrt %13 : vector<1x128xf32>
    %15 = vector.broadcast %14 : vector<1x128xf32> to vector<16x128xf32>
    %16 = arith.mulf %6, %15 : vector<16x128xf32>
    %c0_5 = arith.constant 0 : index
    %c0_6 = arith.constant 0 : index
    %17 = vector.load %arg2[%c0_5, %c0_6] : memref<16x128xf32, #tpu.memory_space<vmem>>, vector<16x128xf32>
    tpu.vector_store %arg2[%c0_5, %c0_6], %16 {strides = array<i32>} : memref<16x128xf32, #tpu.memory_space<vmem>>, vector<16x128xf32>,
    return
  }
  func.func @transform_0(%arg0: i32) -> (i32, i32) {
    %c0_i32 = arith.constant 0 : i32
    %c0_i32_0 = arith.constant 0 : i32
    return %c0_i32, %arg0 : i32, i32
  }
  func.func @transform_1(%arg0: i32) -> (i32, i32) {
    %c0_i32 = arith.constant 0 : i32
    %c0_i32_0 = arith.constant 0 : i32
    return %c0_i32, %arg0 : i32, i32
  }
}

</mosaic_0001>

<bundles_post_ra>
// kernel: tpu_custom_call.1
= control target key start
LH: loop header
LB: loop body
LE: loop exit
PB: predicated region body
PF: predicated region fallthrough
CT: control target
= control target key end

     0   :  { %6 = vsyncpa [#allocation3], 0  ;;  %s146_s0 = inlined_call_operand.hbm [shape: f32[16,128], index: 0, kind: input, shape index: {}]   ;;  %s147_s1 = inlined_call_operand.hbm [shape: f32[16,128], index: 1, kind: output, shape index: {}]  }
   0x1   :  { %7 = vsyncpa [#allocation4], 0  ;;  %s120_s6 = smov [#allocation2]  }
   0x2   :  { %s13_s7 = sshll.u32 %s120_s6, 4  ;;  %s14_s7 = int_to_ptr.vmem [resolvable:$true] %s13_s7 }
   0x3   :  { %s84_s8 = scalar_lea.vmem %s14_s7, 256  ;;  %p89_p1 = scmp.lt.s32.totalorder %s14_s7, %s14_s7 }
   0x4   :  { %p85_p0 = scmp.ne.s32.totalorder %s14_s7, %s84_s8  ;;  %p90_p2 = scmp.lt.s32.totalorder %s84_s8, %s84_s8 }
   0x6   :  { %p91_p3 = por %p90_p2, %p89_p1 }
   0x8   :  { %p92_p4 = pnand %p91_p3, %p85_p0 }
   0xa   :  { %95 = shalt.err (!%p92_p4)
}
   0xb   :  { %s121_s9 = smov 128   ;;  %s122_s10 = smov 8  }
   0xc   :  { %19 = dma.hbm_to_vmem [thread:$0]  %s146_s0, 256, %s14_s7, [#allocation3], %s121_s9, %s121_s9, %s122_s10  }
   0xd   :  { %116 = dma.done.wait [#allocation3], 256  }
   0xe   :  { %117 = vsyncadd [#allocation3], 4294967040  ;;  %v23_v0 = vld [vmem:[#allocation2] sm:$0xff]  ;;  %v24_v1 = vld [vmem:[#allocation2 + $0x8] sm:$0xff]  ;;  %s123_s0 = smov [#allocation5]  }
   0xf   :  { %v25_v2 = vadd.f32 %v24_v1, %v23_v0  ;;  %s58_s13 = sshll.u32 %s123_s0, 4  ;;  %s59_s13 = int_to_ptr.vmem [resolvable:$true] %s58_s13 }
  0x10   :  { %s96_s14 = scalar_lea.vmem %s59_s13, 256  ;;  %p101_p6 = scmp.lt.s32.totalorder %s59_s13, %s59_s13 }
  0x11   :  { %v26_v3 = vrot.slane %v25_v2, 4  ;;  %p97_p5 = scmp.ne.s32.totalorder %s59_s13, %s96_s14  ;;  %p102_p7 = scmp.lt.s32.totalorder %s96_s14, %s96_s14 }
  0x13   :  { %v27_v4 = vadd.f32 %v26_v3, %v25_v2  ;;  %p103_p8 = por %p102_p7, %p101_p6 }
  0x15   :  { %v28_v5 = vrot.slane %v27_v4, 2  ;;  %p104_p9 = pnand %p103_p8, %p97_p5 }
  0x17   :  { %v29_v6 = vadd.f32 %v28_v5, %v27_v4 }
  0x19   :  { %v30_v7 = vrot.slane %v29_v6, 1 }
  0x1b   :  { %v31_v8 = vadd.f32 %v30_v7, %v29_v6 }
  0x1d   :  { %v33_v9 = vmul.f32 0.0625, %v31_v8 }
  0x1f   :  { %v34_v10 = vsub.f32 %v23_v0, %v33_v9  ;;  %v35_v11 = vsub.f32 %v24_v1, %v33_v9 }
  0x21   :  { %v36_v12 = vmul.f32 %v34_v10, %v34_v10  ;;  %v37_v13 = vmul.f32 %v35_v11, %v35_v11 }
  0x23   :  { %v38_v14 = vadd.f32 %v37_v13, %v36_v12 }
  0x25   :  { %v39_v15 = vrot.slane %v38_v14, 4 }
  0x27   :  { %v40_v16 = vadd.f32 %v39_v15, %v38_v14 }
  0x29   :  { %v41_v17 = vrot.slane %v40_v16, 2 }
  0x2b   :  { %v42_v18 = vadd.f32 %v41_v17, %v40_v16 }
  0x2d   :  { %v43_v19 = vrot.slane %v42_v18, 1 }
  0x2f   :  { %v44_v20 = vadd.f32 %v43_v19, %v42_v18 }
  0x31   :  { %v46_v21 = vmul.f32 0.06666667, %v44_v20 }
  0x33   :  { %v47_v22 = vadd.f32 0.001, %v46_v21 }
  0x35   :  { %74 = vrsqrt.f32 %v47_v22 }
  0x42   :  { %v75_v23 = vpop.eup %74 }
  0x43   :  { %v49_v24 = vmul.f32 %v75_v23, %v34_v10  ;;  %v50_v25 = vmul.f32 %v75_v23, %v35_v11 }
  0x45   :  { %51 = vst [vmem:[#allocation5] sm:$0xff] %v49_v24  ;;  %52 = vst [vmem:[#allocation5 + $0x8] sm:$0xff] %v50_v25 }
  0x46   :  { %107 = shalt.err (!%p104_p9)
}
  0x47   :  { %64 = dma.vmem_to_hbm [thread:$0]  %s59_s13, 256, %s147_s1, [#allocation4], %s121_s9, %s121_s9, %s122_s10  }
  0x48   :  { %118 = dma.done.wait [#allocation4], 256  }
  0x49   :  { %119 = vsyncadd [#allocation4], 4294967040 }
  0x4a   :  { %68 = vsyncpa [#allocation3], 1 }
  0x4b   :  { %69 = vsyncpa [#allocation4], 1 }

</bundles_post_ra>
